<compile_context>
chip_gen: v7x
topology: tpu7x:2x2x1
jax: 0.10.0
libtpu: 0.0.40
codegen_flags: <defaults>
</compile_context>

<pallas_src>
import numpy as np
import jax
import jax.numpy as jnp
from jax.experimental import pallas as pl
from jax.experimental.pallas import tpu as pltpu

LEAKY_SLOPE = 0.01   # nn.LeakyReLU() default negative_slope
_K = 3               # ConvBlockDropout kernel_size (seq='COBA', stride=1)


def _round_up(x, m):
    return ((x + m - 1) // m) * m


def _vmem_step_bytes(tm, halo_al, cin, cout):
    """Rough per-grid-step VMEM footprint: double-buffered blocks + in-kernel temps."""
    blocks = 2 * (cin * tm * 2 + cin * halo_al * 2 + cout * tm * 4)
    temps = (cin * (tm + halo_al) * 2             # slab
             + 9 * cin * (tm + _K - 1) * 2        # patch
             + 3 * cout * (tm + _K - 1) * 4       # y
             + cout * tm * 4)                     # acc
    return blocks + temps


def _pick_tiles(m_in, halo, cin, cout, n_batch, target_tm=2048, vmem_budget=24 << 20):
    """Choose (tm, nt, halo_al): lane tile, number of M-tiles, halo-block width."""
    halo128 = _round_up(halo, 128)
    tm = max(_round_up(min(target_tm, m_in), 128), halo128)
    # Halo-dominated tiles: doubling tm halves the relative halo re-read and the grid
    # step count, as long as it stays inside the (v7x-safe) VMEM budget.
    if (tm == halo128 and m_in >= 2 * tm
            and _vmem_step_bytes(2 * tm, tm, cin, cout) <= vmem_budget):
        tm *= 2
    # Shrink (never below the halo, never to 128-wide slivers) if over the VMEM budget.
    while tm - 128 >= max(halo128, 512) and _vmem_step_bytes(tm, halo128, cin, cout) > vmem_budget:
        tm -= 128
    nt = -(-m_in // tm)
    # Keep >=2 total grid steps so a 2-TensorCore chip (v7x) is not half idle.
    if n_batch * nt < 2 and (tm // 2) % 128 == 0 and tm // 2 >= max(halo128, 256):
        tm //= 2
        nt = -(-m_in // tm)
    # Halo block width: the smallest 128-multiple divisor of tm that covers the halo.
    halo_al = tm
    d = 128
    while d < tm:
        if tm % d == 0 and d >= halo:
            halo_al = d
            break
        d += 128
    return tm, nt, halo_al


def _make_kernel(H, W, cin, cout, tm, slope):
    kk_offsets = tuple((kd * H + kh) * W for kd in range(_K) for kh in range(_K))
    tm_ext = tm + _K - 1

    def kernel(xm_ref, xh_ref, wk_ref, s_ref, o_ref):
        # Haloed slab of the channel-major flat input; local column j == flat index
        # (tile_start + j).  Shape (Cin, tm + halo_al), bf16.
        slab = jnp.concatenate([xm_ref[...], xh_ref[...]], axis=-1)
        # In-kernel patch gather over the (kd, kh) taps only: 9 statically-offset
        # slices stacked along the contraction axis -> (9*Cin, tm_ext).
        patch = jnp.concatenate([slab[:, off:off + tm_ext] for off in kk_offsets], axis=0)
        # One MXU matmul (f32 accumulation); the kw taps are the 3 row-groups of wk.
        y = jnp.dot(wk_ref[...], patch, preferred_element_type=jnp.float32)
        # Epilogue: kw shift-add + folded conv-bias / eval-BN shift, then LeakyReLU.
        acc = s_ref[...] + y[0:cout, 0:tm]
        for kw in range(1, _K):
            acc = acc + y[kw * cout:(kw + 1) * cout, kw:kw + tm]
        # TODO(synk): nn.Dropout(p=0.1) is identity in eval mode; training-mode random
        # masking is intentionally not implemented.
        o_ref[...] = jnp.where(acc >= 0.0, acc, slope * acc).astype(o_ref.dtype)

    return kernel


def fused_conv3x3_bn_lrelu(x_flat, wk, shift, *, H, W, tm, nt, halo_al):
    """x_flat: (N, Cin, nt*tm + halo_al) bf16 channel-major flat input (zero padded);
    wk: (3*Cout, 9*Cin) bf16 BN-folded weights; shift: (Cout, 1) f32."""
    N, Cin, _ = x_flat.shape
    Cout = shift.shape[0]
    m_out = nt * tm
    q = tm // halo_al   # halo block index stride (halo_al divides tm by construction)

    kernel = _make_kernel(H, W, Cin, Cout, tm, LEAKY_SLOPE)

    flops = 2 * N * nt * (3 * Cout) * (9 * Cin) * (tm + _K - 1)
    bytes_accessed = (N * Cin * (m_out + halo_al) * 2      # main input read (bf16)
                      + N * nt * Cin * halo_al * 2         # halo re-read
                      + int(wk.size) * 2 + int(shift.size) * 4
                      + N * Cout * m_out * 4)              # f32 output write
    est = _vmem_step_bytes(tm, halo_al, Cin, Cout)
    vmem_limit = int(min(64 << 20, max(32 << 20, 2 * est)))

    return pl.pallas_call(
        kernel,
        out_shape=jax.ShapeDtypeStruct((N, Cout, m_out), jnp.float32),
        grid=(N, nt),
        in_specs=[
            # lane-dense main tile of the flat input
            pl.BlockSpec((None, Cin, tm), lambda n, m: (n, 0, m)),
            # halo: the first halo_al flat elements *after* the main tile
            pl.BlockSpec((None, Cin, halo_al), lambda n, m: (n, 0, (m + 1) * q)),
            # fused (BN-scaled) weights and per-channel shift stay resident
            pl.BlockSpec((3 * Cout, 9 * Cin), lambda n, m: (0, 0)),
            pl.BlockSpec((Cout, 1), lambda n, m: (0, 0)),
        ],
        out_specs=pl.BlockSpec((None, Cout, tm), lambda n, m: (n, 0, m)),
        compiler_params=pltpu.CompilerParams(
            dimension_semantics=("parallel", "parallel"),
            vmem_limit_bytes=vmem_limit),
        cost_estimate=pl.CostEstimate(flops=flops, transcendentals=0,
                                      bytes_accessed=bytes_accessed),
    )(x_flat, x_flat, wk, shift)


def conv_block_dropout_forward(x_ncdhw, params):
    """ConvBlockDropout(in_chan, seq='COBA').forward in eval mode."""
    w = params["conv_w"]            # (Cout, Cin, 3, 3, 3)  (PyTorch Conv3d layout)
    bias = params["conv_b"]         # (Cout,)
    gamma, beta = params["bn_gamma"], params["bn_beta"]
    rmean, rvar = params["bn_mean"], params["bn_var"]
    eps = 1e-5

    Cout, Cin = w.shape[0], w.shape[1]
    N, _, D, H, W = x_ncdhw.shape
    Do, Ho, Wo = D - _K + 1, H - _K + 1, W - _K + 1

    # Eval-mode BatchNorm folded into the conv:  y = scale*(conv(x) + bias - mean) + beta
    scale = gamma / jnp.sqrt(rvar + eps)
    shift = ((bias - rmean) * scale + beta).reshape(Cout, 1).astype(jnp.float32)
    # Weight matrix (3*Cout, 9*Cin): rows = (kw, co), cols = (kd, kh, ci), BN scale folded.
    wk = (jnp.transpose(w * scale[:, None, None, None, None], (4, 0, 2, 3, 1))
          .reshape(_K * Cout, _K * _K * Cin).astype(jnp.bfloat16))

    M_in = D * H * W
    halo = (_K - 1) * (H * W + W + 1)           # max flat tap offset
    tm, nt, halo_al = _pick_tiles(M_in, halo, Cin, Cout, N)
    L_pad = nt * tm + halo_al

    # Channel-major flat layout: just a reshape + zero-pad of x (~1x input traffic);
    # this replaces the previous 27x im2col materialization and its extra pad pass.
    x_flat = x_ncdhw.reshape(N, Cin, M_in).astype(jnp.bfloat16)
    x_flat = jnp.pad(x_flat, ((0, 0), (0, 0), (0, L_pad - M_in)))

    out = fused_conv3x3_bn_lrelu(x_flat, wk, shift,
                                 H=H, W=W, tm=tm, nt=nt, halo_al=halo_al)
    # Output lives on the input spatial grid; extract the valid (Do, Ho, Wo) region.
    out = out[:, :, :M_in].reshape(N, Cout, D, H, W)
    return out[:, :, :Do, :Ho, :Wo]


if __name__ == "__main__":
    # ConvBlockDropout(in_chan=4) -> out_chan=4, kernel_size=3, stride=1, seq='COBA'
    N, Cin, D, H, W = 2, 4, 10, 10, 10
    Cout, ksize = 4, 3

    key = jax.random.PRNGKey(0)
    kx, kw, kb, kg, kbe, km, kv = jax.random.split(key, 7)
    x = jax.random.normal(kx, (N, Cin, D, H, W), dtype=jnp.float32)
    params = {
        "conv_w": 0.1 * jax.random.normal(kw, (Cout, Cin, ksize, ksize, ksize), jnp.float32),
        "conv_b": 0.1 * jax.random.normal(kb, (Cout,), jnp.float32),
        "bn_gamma": 1.0 + 0.1 * jax.random.normal(kg, (Cout,), jnp.float32),
        "bn_beta": 0.1 * jax.random.normal(kbe, (Cout,), jnp.float32),
        "bn_mean": 0.1 * jax.random.normal(km, (Cout,), jnp.float32),
        "bn_var": 1.0 + 0.1 * jnp.abs(jax.random.normal(kv, (Cout,), jnp.float32)),
    }

    out = jax.block_until_ready(conv_block_dropout_forward(x, params))

    # numpy reference with identical eval-mode semantics
    xn = np.asarray(x)
    wn = np.asarray(params["conv_w"])
    Do, Ho, Wo = D - ksize + 1, H - ksize + 1, W - ksize + 1
    ref = np.zeros((N, Cout, Do, Ho, Wo), np.float32)
    for kd in range(ksize):
        for kh in range(ksize):
            for kw_ in range(ksize):
                xs = xn[:, :, kd:kd + Do, kh:kh + Ho, kw_:kw_ + Wo]
                ref += np.einsum("ncdhw,oc->nodhw", xs, wn[:, :, kd, kh, kw_])
    ref += np.asarray(params["conv_b"]).reshape(1, Cout, 1, 1, 1)
    sc = np.asarray(params["bn_gamma"]) / np.sqrt(np.asarray(params["bn_var"]) + 1e-5)
    sh = np.asarray(params["bn_beta"]) - np.asarray(params["bn_mean"]) * sc
    ref = ref * sc.reshape(1, Cout, 1, 1, 1) + sh.reshape(1, Cout, 1, 1, 1)
    ref = np.where(ref >= 0, ref, LEAKY_SLOPE * ref).astype(np.float32)

    assert out.shape == ref.shape, (out.shape, ref.shape)
    assert np.allclose(np.asarray(out), ref, atol=5e-2, rtol=5e-2)
    print("KERNEL_OK")
</pallas_src>

<mosaic_0001>
module attributes {stable_mosaic.version = 11 : i64} {
  func.func @kernel(%arg0: i32, %arg1: i32, %arg2: memref<1x4x1024xbf16, #tpu.memory_space<vmem>>, %arg3: memref<1x4x256xbf16, #tpu.memory_space<vmem>>, %arg4: memref<12x36xbf16, #tpu.memory_space<vmem>>, %arg5: memref<4x1xf32, #tpu.memory_space<vmem>>, %arg6: memref<1x4x1024xf32, #tpu.memory_space<vmem>>) attributes {dimension_semantics = [#tpu.dimension_semantics<parallel>, #tpu.dimension_semantics<parallel>], iteration_bounds = array<i64: 2, 1>, scalar_prefetch = 0 : i64, scratch_operands = 0 : i64, tpu.core_type = #tpu.core_type<tc>, window_params = [{transform_indices = @transform_0, window_bounds = array<i64: 1, 4, 1024>}, {transform_indices = @transform_1, window_bounds = array<i64: 1, 4, 256>}, {pipeline_mode = #tpu.pipeline_mode<synchronous>, transform_indices = @transform_2, window_bounds = array<i64: 12, 36>}, {pipeline_mode = #tpu.pipeline_mode<synchronous>, transform_indices = @transform_3, window_bounds = array<i64: 4, 1>}, {transform_indices = @transform_4, window_bounds = array<i64: 1, 4, 1024>}]} {
    %c0 = arith.constant 0 : index
    %c0_0 = arith.constant 0 : index
    %c0_1 = arith.constant 0 : index
    %0 = vector.load %arg2[%c0, %c0_0, %c0_1] : memref<1x4x1024xbf16, #tpu.memory_space<vmem>>, vector<1x4x1024xbf16>
    %1 = vector.shape_cast %0 : vector<1x4x1024xbf16> to vector<4x1024xbf16>
    %c0_2 = arith.constant 0 : index
    %c0_3 = arith.constant 0 : index
    %c0_4 = arith.constant 0 : index
    %2 = vector.load %arg3[%c0_2, %c0_3, %c0_4] : memref<1x4x256xbf16, #tpu.memory_space<vmem>>, vector<1x4x256xbf16>
    %3 = vector.shape_cast %2 : vector<1x4x256xbf16> to vector<4x256xbf16>
    %4 = tpu.concatenate %1, %3 in 1 : vector<4x1024xbf16>, vector<4x256xbf16> -> vector<4x1280xbf16>
    %5 = vector.extract_strided_slice %4 {offsets = [0, 0], sizes = [4, 1026], strides = [1, 1]} : vector<4x1280xbf16> to vector<4x1026xbf16>
    %6 = vector.extract_strided_slice %4 {offsets = [0, 10], sizes = [4, 1026], strides = [1, 1]} : vector<4x1280xbf16> to vector<4x1026xbf16>
    %7 = vector.extract_strided_slice %4 {offsets = [0, 20], sizes = [4, 1026], strides = [1, 1]} : vector<4x1280xbf16> to vector<4x1026xbf16>
    %8 = vector.extract_strided_slice %4 {offsets = [0, 100], sizes = [4, 1026], strides = [1, 1]} : vector<4x1280xbf16> to vector<4x1026xbf16>
    %9 = vector.extract_strided_slice %4 {offsets = [0, 110], sizes = [4, 1026], strides = [1, 1]} : vector<4x1280xbf16> to vector<4x1026xbf16>
    %10 = vector.extract_strided_slice %4 {offsets = [0, 120], sizes = [4, 1026], strides = [1, 1]} : vector<4x1280xbf16> to vector<4x1026xbf16>
    %11 = vector.extract_strided_slice %4 {offsets = [0, 200], sizes = [4, 1026], strides = [1, 1]} : vector<4x1280xbf16> to vector<4x1026xbf16>
    %12 = vector.extract_strided_slice %4 {offsets = [0, 210], sizes = [4, 1026], strides = [1, 1]} : vector<4x1280xbf16> to vector<4x1026xbf16>
    %13 = vector.extract_strided_slice %4 {offsets = [0, 220], sizes = [4, 1026], strides = [1, 1]} : vector<4x1280xbf16> to vector<4x1026xbf16>
    %14 = tpu.concatenate %5, %6, %7, %8, %9, %10, %11, %12, %13 in 0 : vector<4x1026xbf16>, vector<4x1026xbf16>, vector<4x1026xbf16>, vector<4x1026xbf16>, vector<4x1026xbf16>, vector<4x1026xbf16>, vector<4x1026xbf16>, vector<4x1026xbf16>, vector<4x1026xbf16> -> vector<36x1026xbf16>
    %c0_5 = arith.constant 0 : index
    %c0_6 = arith.constant 0 : index
    %15 = vector.load %arg4[%c0_5, %c0_6] : memref<12x36xbf16, #tpu.memory_space<vmem>>, vector<12x36xbf16>
    %cst = arith.constant dense<0.000000e+00> : vector<12x1026xf32>
    %16 = tpu.matmul %15, %14, %cst {dimension_numbers = #tpu.dot_dimension_numbers<[1], [0], [0], [1], [0, 0, 1, 1], [], []>} : vector<12x36xbf16>, vector<36x1026xbf16>, vector<12x1026xf32> -> vector<12x1026xf32>
    %c0_7 = arith.constant 0 : index
    %c0_8 = arith.constant 0 : index
    %17 = vector.load %arg5[%c0_7, %c0_8] : memref<4x1xf32, #tpu.memory_space<vmem>>, vector<4x1xf32>
    %18 = vector.extract_strided_slice %16 {offsets = [0, 0], sizes = [4, 1024], strides = [1, 1]} : vector<12x1026xf32> to vector<4x1024xf32>
    %19 = vector.broadcast %17 : vector<4x1xf32> to vector<4x1024xf32>
    %20 = arith.addf %19, %18 : vector<4x1024xf32>
    %21 = vector.extract_strided_slice %16 {offsets = [4, 1], sizes = [4, 1024], strides = [1, 1]} : vector<12x1026xf32> to vector<4x1024xf32>
    %22 = arith.addf %20, %21 : vector<4x1024xf32>
    %23 = vector.extract_strided_slice %16 {offsets = [8, 2], sizes = [4, 1024], strides = [1, 1]} : vector<12x1026xf32> to vector<4x1024xf32>
    %24 = arith.addf %22, %23 : vector<4x1024xf32>
    %cst_9 = arith.constant 0.000000e+00 : f32
    %25 = vector.broadcast %cst_9 : f32 to vector<4x1024xf32>
    %26 = arith.cmpf oge, %24, %25 : vector<4x1024xf32>
    %cst_10 = arith.constant 0.00999999977 : f32
    %27 = vector.broadcast %cst_10 : f32 to vector<4x1024xf32>
    %28 = arith.mulf %27, %24 : vector<4x1024xf32>
    %29 = arith.select %26, %24, %28 : vector<4x1024xi1>, vector<4x1024xf32>
    %c0_11 = arith.constant 0 : index
    %c0_12 = arith.constant 0 : index
    %c0_13 = arith.constant 0 : index
    %30 = vector.load %arg6[%c0_11, %c0_12, %c0_13] : memref<1x4x1024xf32, #tpu.memory_space<vmem>>, vector<1x4x1024xf32>
    %31 = vector.shape_cast %30 : vector<1x4x1024xf32> to vector<4x1024xf32>
    %32 = vector.shape_cast %29 : vector<4x1024xf32> to vector<1x4x1024xf32>
    tpu.vector_store %arg6[%c0_11, %c0_12, %c0_13], %32 {strides = array<i32>} : memref<1x4x1024xf32, #tpu.memory_space<vmem>>, vector<1x4x1024xf32>,
    return
  }
  func.func @transform_0(%arg0: i32, %arg1: i32) -> (i32, i32, i32) {
    %c0_i32 = arith.constant 0 : i32
    %c0_i32_0 = arith.constant 0 : i32
    return %arg0, %c0_i32, %arg1 : i32, i32, i32
  }
  func.func @transform_1(%arg0: i32, %arg1: i32) -> (i32, i32, i32) {
    %c1_i32 = arith.constant 1 : i32
    %0 = arith.addi %arg1, %c1_i32 : i32
    %c4_i32 = arith.constant 4 : i32
    %1 = arith.muli %0, %c4_i32 : i32
    %c0_i32 = arith.constant 0 : i32
    %c0_i32_0 = arith.constant 0 : i32
    return %arg0, %c0_i32, %1 : i32, i32, i32
  }
  func.func @transform_2(%arg0: i32, %arg1: i32) -> (i32, i32) {
    %c0_i32 = arith.constant 0 : i32
    %c0_i32_0 = arith.constant 0 : i32
    %c0_i32_1 = arith.constant 0 : i32
    return %c0_i32, %c0_i32_0 : i32, i32
  }
  func.func @transform_3(%arg0: i32, %arg1: i32) -> (i32, i32) {
    %c0_i32 = arith.constant 0 : i32
    %c0_i32_0 = arith.constant 0 : i32
    %c0_i32_1 = arith.constant 0 : i32
    return %c0_i32, %c0_i32_0 : i32, i32
  }
  func.func @transform_4(%arg0: i32, %arg1: i32) -> (i32, i32, i32) {
    %c0_i32 = arith.constant 0 : i32
    %c0_i32_0 = arith.constant 0 : i32
    return %arg0, %c0_i32, %arg1 : i32, i32, i32
  }
}

</mosaic_0001>

<bundles_post_ra>
// kernel: tpu_custom_call.1
= control target key start
LH: loop header
LB: loop body
LE: loop exit
PB: predicated region body
PF: predicated region fallthrough
CT: control target
= control target key end

     0   :  { %9 = vsyncpa [#allocation3], 0  ;;  %s2271_s0 = inlined_call_operand.hbm [shape: bf16[2,4,1280], index: 0, kind: input, shape index: {}]   ;;  %s2272_s1 = inlined_call_operand.hbm [shape: bf16[2,4,1280], index: 1, kind: input, shape index: {}]   ;;  %s2273_s2 = inlined_call_operand.vmem [shape: bf16[12,36], index: 2, kind: input, shape index: {}]   ;;  %s2274_s3 = inlined_call_operand.vmem [shape: f32[4,1], index: 3, kind: input, shape index: {}]   ;;  %s2275_s4 = inlined_call_operand.hbm [shape: f32[2,4,1024], index: 4, kind: output, shape index: {}]  }
   0x1   :  { %11 = vsyncpa [#allocation3 + $0x1], 0 }
   0x2   :  { %12 = vsyncpa [#allocation6], 0 }
   0x3   :  { %14 = vsyncpa [#allocation6 + $0x1], 0 }
   0x4   :  { %15 = vsyncpa [#allocation4], 0 }
   0x5   :  { %17 = vsyncpa [#allocation4 + $0x1], 0  ;;  %s1606_s15 = smov 0   ;;  %s1608_s16 = smov 0  }
   0x6   :  { %s1610_s17 = smov 0   ;;  %s1612_s18 = smov 0  }
   0x7   :  { %s1614_s19 = smov 0   ;;  %s1616_s20 = smov 0  }
   0x8 LB: > { %s1286_s21 = sadd.s32 4294967295, %s1562_s20   ;;  %s1287_s22 = sadd.s32 4294967294, %s1562_s20   ;;  %s1562_s20 = sphi %s1616_s20, %s23_s20   ;;  %s1558_s19 = sphi %s1614_s19, %s2294_s19   ;;  %s1554_s18 = sphi %s1612_s18, %s2293_s18   ;;  %s1550_s17 = sphi %s1610_s17, %s2292_s17   ;;  %s1546_s16 = sphi %s1608_s16, %s2291_s16   ;;  %s1542_s15 = sphi %s1606_s15, %s2290_s15  }
   0x9   : > { %s35_s23 = sadd.s32 1, %s1558_s19  ;;  %s44_s24 = sadd.s32 1, %s1550_s17 }
   0xa   : > { %p37_p0 = scmp.ge.s32.totalorder %s35_s23, 2  ;;  %p51_p1 = scmp.ne.s32.totalorder %s1550_s17, %s1546_s16 }
   0xb   : > { %p52_p2 = scmp.eq.s32.totalorder %s1562_s20, 0  ;;  %p57_p3 = scmp.ne.s32.totalorder %s1546_s16, %s1542_s15 }
   0xc   : > { %s2296_s23 = smov (%p37_p0, %s35_s23), 0  ;;  %p58_p5 = scmp.eq.s32.totalorder %s1286_s21, 0 }
   0xd   : > { %p1647_p4 = por %p52_p2, %p51_p1  ;;  %s39_s26 = ssub.s32 %s1558_s19, %s2296_s23 }
   0xe   : > { %p157_p6 = scmp.eq.s32.totalorder %s1286_s21, 1  ;;  %p42_p7 = scmp.eq.s32.totalorder %s39_s26, 0 }
   0xf   : > { %p1653_p8 = por %p58_p5, %p57_p3  ;;  %p163_p10 = scmp.eq.s32.totalorder %s1287_s22, 1 }
  0x10   : > { %p1657_p9 = por %p157_p6, %p51_p1  ;;  %p1347_p13 = scmp.lt.s32.totalorder %s1562_s20, 2 }
  0x11   : > { %s2279_s27 = scalar_select %p1653_p8, 1, 0 }
  0x12   : > { %s2280_s28 = scalar_select %p1657_p9, 1, 0 }
  0x13   : > { %s1662_s29 = scalar_select %p42_p7, %s1550_s17, %s44_s24  }
  0x14   : > { %p1664_p11 = por %p163_p10, %p57_p3  ;;  %s1671_s5 = sand.u32 1, %s1550_s17  }
  0x15   : > { %s1290_s6 = sshll.u32 %s1671_s5, 4  ;;  %s1329_s7 = smul.u32 320, %s1558_s19 }
  0x16   : > { %s2281_s30 = scalar_select %p1664_p11, 1, 0 }
  0x17   : > { %s193_s8 = scalar_lea.vmem [#allocation2], %s1290_s6  ;;  %p1677_p0 = pnand %p1347_p13, %p1647_p4 }
  0x18   : > { %s209_s9 = sshll.u32 %s193_s8, 4  ;;  %s1686_s13 = scalar_lea.hbm %s2271_s0, %s1329_s7  ;;  %s1688_s9 = int_to_ptr.vmem [resolvable:$true] %s209_s9 }
  0x19   : > { %s190_s14 = scalar_lea.sflag [#allocation3], %s1671_s5  ;;  %s1415_s21 = scalar_lea.hbm %s1686_s13, 256 }
  0x1a   : > { %p1416_p2 = scmp.ne.s32.totalorder %s1686_s13, %s1415_s21  ;;  %p1417_p3 = pneg %p1677_p0 }
  0x1b   : > { %s1420_s25 = scalar_lea.hbm %s2271_s0, 640  ;;  %p1421_p6 = scmp.lt.u32.totalorder %s1686_s13, %s2271_s0 }
  0x1c   : > { %p1418_p4 = pnand %p1417_p3, %p1416_p2  ;;  %p1422_p7 = scmp.lt.u32.totalorder %s1420_s25, %s1415_s21 }
  0x1d   : > { %p1424_p13 = scmp.lt.u32.totalorder %s1415_s21, %s1686_s13 }
  0x1e   : > { %p1419_p5 = pneg %p1418_p4  ;;  %p1423_p10 = por %p1422_p7, %p1421_p6 }
  0x20   : > { %p1425_p12 = por %p1424_p13, %p1423_p10 }
  0x22   : > { %p1426_p1 = pnand %p1425_p12, %p1419_p5 }
  0x24   : > { %1429 = shalt.err (!%p1426_p1)
}
  0x25   : > { %s1430_s8 = scalar_lea.vmem %s1688_s9, 256  ;;  %s1564_s11 = smov [#allocation2]  }
  0x26   : > { %p1431_p2 = scmp.ne.s32.totalorder %s1688_s9, %s1430_s8  ;;  %s1435_s12 = sshll.u32 %s1564_s11, 4  ;;  %s1436_s12 = int_to_ptr.vmem [resolvable:$false] %s1435_s12 }
  0x27   : > { %s1437_s22 = scalar_lea.vmem %s1436_s12, 512  ;;  %p1438_p9 = scmp.lt.s32.totalorder %s1688_s9, %s1436_s12 }
  0x28   : > { %p1433_p4 = pnand %p1431_p2, %p1417_p3  ;;  %p1439_p6 = scmp.lt.s32.totalorder %s1437_s22, %s1430_s8 }
  0x2a   : > { %p1434_p11 = pneg %p1433_p4  ;;  %p1440_p7 = por %p1439_p6, %p1438_p9 }
  0x2c   : > { %p1441_p10 = pnand %p1440_p7, %p1434_p11 }
  0x2e   : > { %1444 = shalt.err (!%p1441_p10)
}
  0x2f   : > { %1339 = dma.hbm_to_vmem [thread:$0]  (!%p1677_p0), %s1686_s13, 256, %s1688_s9, %s190_s14  }
  0x30   : > { %p237_p12 = scmp.lt.s32.totalorder %s1562_s20, 3  ;;  %s1292_s21 = sshll.u32 %s1671_s5, 2 }
  0x31   : > { %s1217_s26 = scalar_lea.hbm %s2272_s1, %s1329_s7  ;;  %p2283_p9 = scmp.ge.s32.totalorder %s1562_s20, 1 }
  0x32   : > { %s1730_s8 = scalar_lea.hbm %s1217_s26, 256  ;;  %s220_s11 = scalar_lea.vmem [#allocation5], %s1292_s21 }
  0x33   : > { %p1726_p11 = pnand %p2283_p9, %p237_p12  ;;  %s232_s12 = sshll.u32 %s220_s11, 4  ;;  %s233_s12 = int_to_ptr.vmem [resolvable:$true] %s232_s12 }
  0x34   : > { %s217_s9 = scalar_lea.sflag [#allocation6], %s1671_s5  ;;  %s1475_s13 = scalar_lea.hbm %s1217_s26, 320 }
  0x35   : > { %s2284_s6 = scalar_select %p1726_p11, 1, 0 }
  0x36   : > { %p1446_p1 = scmp.ne.s32.totalorder %s1730_s8, %s1475_s13  ;;  %s1450_s22 = scalar_lea.hbm %s2272_s1, 640 }
  0x37   : > { %p1451_p2 = scmp.lt.u32.totalorder %s1730_s8, %s2272_s1  ;;  %p1452_p4 = scmp.lt.u32.totalorder %s1450_s22, %s1475_s13 }
  0x38   : > { %p1448_p5 = pnand %p1446_p1, %p1417_p3  ;;  %p1454_p7 = scmp.lt.u32.totalorder %s1475_s13, %s1730_s8 }
  0x39   : > { %p1453_p6 = por %p1452_p4, %p1451_p2 }
  0x3a   : > { %p1449_p13 = pneg %p1448_p5 }
  0x3b   : > { %p1455_p10 = por %p1454_p7, %p1453_p6 }
  0x3d   : > { %p1456_p12 = pnand %p1455_p10, %p1449_p13 }
  0x3f   : > { %1459 = shalt.err (!%p1456_p12)
}
  0x40   : > { %s1460_s5 = scalar_lea.vmem %s233_s12, 64  ;;  %s1565_s21 = smov [#allocation5]  }
  0x41   : > { %p1461_p9 = scmp.ne.s32.totalorder %s233_s12, %s1460_s5  ;;  %s1465_s26 = sshll.u32 %s1565_s21, 4  ;;  %s1466_s26 = int_to_ptr.vmem [resolvable:$false] %s1465_s26 }
  0x42   : > { %s1467_s11 = scalar_lea.vmem %s1466_s26, 128  ;;  %p1468_p8 = scmp.lt.s32.totalorder %s233_s12, %s1466_s26 }
  0x43   : > { %p1463_p1 = pnand %p1461_p9, %p1417_p3  ;;  %p1469_p11 = scmp.lt.s32.totalorder %s1467_s11, %s1460_s5 }
  0x45   : > { %p1464_p5 = pneg %p1463_p1  ;;  %p1470_p2 = por %p1469_p11, %p1468_p8 }
  0x47   : > { %p1471_p4 = pnand %p1470_p2, %p1464_p5 }
  0x49   : > { %1474 = shalt.err (!%p1471_p4)
}
  0x4a   : > { %1342 = dma.hbm_to_vmem [thread:$0]  (!%p1677_p0), %s1730_s8, 64, %s233_s12, %s217_s9  }
  0x4b   : > { %p2285_p13 = scmp.ne.s32.totalorder %s2284_s6, 0 }
  0x4c   : > { %s1754_s13 = sand.u32 (!%p2285_p13), 1, %s1546_s16   ;;  %p2286_p8 = scmp.ne.s32.totalorder (!%p2285_p13), %s2279_s27, 0 }
  0x4d   : > { %241 = sbr.rel (%p2285_p13) target bundleno = 721 (0x2d1), region = 36  ;;  %s1295_s7 = sshll.u32 (!%p2285_p13), %s1754_s13, 4 }
  0x4e   : > { %s244_s14 = scalar_lea.sflag (!%p2285_p13), [#allocation3], %s1754_s13  ;;  %s1758_s22 = scalar_lea.vmem (!%p2285_p13), [#allocation2], %s1295_s7 }
  0x54   : > { %1529 = dma.done.wait (%p2286_p8), %s244_s14, 256  }
  0x55   : > { %1531 = vsyncadd (%p2286_p8), %s244_s14, 4294967040  ;;  %s1296_s10 = sshll.u32 %s1754_s13, 2  ;;  %s253_s6 = scalar_lea.sflag [#allocation6], %s1754_s13 }
  0x56   : > { %s1766_s8 = scalar_lea.vmem [#allocation5], %s1296_s10 }
  0x57   : > { %1533 = dma.done.wait (%p2286_p8), %s253_s6, 64  }
  0x58   : > { %1535 = vsyncadd (%p2286_p8), %s253_s6, 4294967232  ;;  %v305_v0 = vlaneseq  ;;  %v1566_v1 = vmov 1983009808   ;;  %v296_v6 = vld [vmem:[%s1758_s22] sm:$0xff]  ;;  %s1567_s27 = smov 118   ;;  %s1568_s12 = smov 108  }
  0x59   : > { %v303_v2 = vunpack.c.l.s4 %v1566_v1  ;;  %v301_v8 = vcombine.high %v296_v6, %v296_v6  ;;  %s1569_s9 = smov 28   ;;  %s1570_s24 = smov 18   ;;  %v297_v21 = vld [vmem:[%s1758_s22 + $0x8] sm:$0xff]  ;;  %v1574_v25 = vmov 0   ;;  %vm371_vm0 = vcmask 965632  }
  0x5a   : > { %v306_v3 = vshrl.u32 %v305_v0, 7  ;;  %s1571_s25 = smov 8   ;;  %s1572_s5 = smov 56   ;;  %v318_v24 = vcombine.high %v297_v21, %v297_v21  ;;  %806 = vmatprep.mubr.bf16.mxu0 %v1574_v25  ;;  %849 = vmatprep.mubr.bf16.mxu1 %v1574_v25  ;;  %vm407_vm1 = vcmask 883712   ;;  %vm443_vm2 = vcmask 228352  }
  0x5b   : > { %v304_v4 = vunpack.c.0.s8 %v303_v2  ;;  %s1573_s21 = smov 46   ;;  %1411 = vset.pattern.permute.xlu0 %v1574_v25  ;;  %s1575_s26 = smov 36   ;;  %v1889_v38 = vld.sshfl [vmem:[%s1766_s8] sm:$0x33 pattern:$0x76325410] }
  0x5c   : > { %v352_v39 = vrot.slane %v1889_v38, 6  ;;  %v388_v41 = vrot.slane %v1889_v38, 4  ;;  %v424_v44 = vrot.slane %v1889_v38, 2  ;;  %vm589_vm3 = vcmask 1041408   ;;  %s1578_s10 = smov 127   ;;  %s1579_s6 = smov 126  }
  0x5d   : > { %v307_v5 = vsub.s32 %v304_v4, %v306_v3  ;;  %vm636_vm4 = vcmask 1045504   ;;  %vm617_vm5 = vcmask 1043456   ;;  %v343_v54 = vcombine.high %v1889_v38, %v1889_v38  ;;  %s1297_s8 = sshll.u32 %s1754_s13, 5  ;;  %p2287_p3 = scmp.ne.s32.totalorder %s2280_s28, 0 }
  0x5e   : > { %vm497_vm6 = vcmask 64512   ;;  %vm470_vm7 = vcmask 146432   ;;  %vm525_vm8 = vcmask 457728   ;;  %vm553_vm9 = vcmask 375808  }
  0x5f   : > { %v1773_v7 = vrot.slane %v296_v6, %v307_v5  ;;  %v1776_v10 = vrot.slane %v301_v8, %v307_v5  ;;  %v1822_v23 = vrot.slane %v297_v21, %v307_v5  ;;  %v1832_v27 = vrot.slane %v318_v24, %v307_v5  ;;  %v987_v8 = vld [vmem:[%s2274_s3] sm:$0xf] }
  0x60   : > { %v534_v63 = vrot.slane %v343_v54, 2  ;;  %vm580_vm10 = vcmask 293888   ;;  %vm1577_vm11 = vmmov 0   ;;  %vm1037_vm12 = vcmask 1039360  }
  0x61   : > { %v344_v9 = vrot.slane %v1773_v7, 6  ;;  %v1780_v11 = vcombine.high %v1773_v7, %v1773_v7  ;;  %v346_v13 = vrot.slane %v1776_v10, 6  ;;  %v380_v14 = vrot.slane %v1773_v7, 4 }
  0x62   : > { %v382_v15 = vrot.slane %v1776_v10, 4  ;;  %v418_v16 = vrot.slane %v1776_v10, 2  ;;  %v416_v18 = vrot.slane %v1773_v7, 2  ;;  %v1810_v19 = vcombine.high %v1776_v10, %v1776_v10 }
  0x63   : > { %353 = vrot.lane.b32.xlu1 %v344_v9, %s1567_s27  ;;  %v345_v12 = vrot.slane %v1780_v11, 6  ;;  %v417_v17 = vrot.slane %v1780_v11, 2  ;;  %v348_v26 = vrot.slane %v1822_v23, 6  ;;  %v1837_v28 = vcombine.high %v1822_v23, %v1822_v23 }
  0x64   : > { %v419_v20 = vrot.slane %v1810_v19, 2  ;;  %v347_v22 = vrot.slane %v1810_v19, 6  ;;  %v350_v29 = vrot.slane %v1832_v27, 6  ;;  %v384_v31 = vrot.slane %v1822_v23, 4 }
  0x65   : > { %355 = vrot.lane.b32.xlu0 %v345_v12, %s1567_s27  ;;  %v349_v30 = vrot.slane %v1837_v28, 6  ;;  %v386_v32 = vrot.slane %v1832_v27, 4  ;;  %v420_v33 = vrot.slane %v1822_v23, 2  ;;  %v422_v34 = vrot.slane %v1832_v27, 2 }
  0x66   : > { %v421_v35 = vrot.slane %v1837_v28, 2  ;;  %v1878_v36 = vcombine.high %v1832_v27, %v1832_v27  ;;  %vm1089_vm13 = vcmask 1031168  }
  0x67   : > { %391 = vrot.lane.b32.xlu1 %v1780_v11, %s1568_s12 }
  0x68   : > { %v423_v37 = vrot.slane %v1878_v36, 2  ;;  %v351_v40 = vrot.slane %v1878_v36, 6 }
  0x69   : > { %357 = vrot.lane.b32.xlu0 %v346_v13, %s1567_s27 }
  0x6b   : > { %389 = vrot.lane.b32.xlu1 %v380_v14, %s1568_s12 }
  0x6d   : > { %393 = vrot.lane.b32.xlu0 %v382_v15, %s1568_s12 }
  0x6f   : > { %429 = vrot.lane.b32.xlu1 %v418_v16, %s1569_s9 }
  0x71   : > { %427 = vrot.lane.b32.xlu0 %v417_v17, %s1569_s9 }
  0x73   : > { %454 = vrot.lane.b32.xlu1 %v1780_v11, %s1570_s24 }
  0x75   : > { %425 = vrot.lane.b32.xlu0 %v416_v18, %s1569_s9 }
  0x77   : > { %481 = vrot.lane.b32.xlu1 %v345_v12, %s1571_s25 }
  0x79   : > { %456 = vrot.lane.b32.xlu0 %v1776_v10, %s1570_s24 }
  0x7b   : > { %452 = vrot.lane.b32.xlu1 %v1773_v7, %s1570_s24 }
  0x7d   : > { %483 = vrot.lane.b32.xlu0 %v346_v13, %s1571_s25 }
  0x7f   : > { %509 = vrot.lane.b32.xlu1 %v382_v15, %s1572_s5 }
  0x81   : > { %479 = vrot.lane.b32.xlu0 %v344_v9, %s1571_s25 }
  0x83   : > { %507 = vrot.lane.b32.xlu1 %v1780_v11, %s1572_s5 }
  0x85   : > { %511 = vrot.lane.b32.xlu0 %v1810_v19, %s1572_s5 }
  0x87   : > { %539 = vrot.lane.b32.xlu1 %v419_v20, %s1573_s21 }
  0x89   : > { %537 = vrot.lane.b32.xlu0 %v418_v16, %s1573_s21 }
  0x8b   : > { %359 = vrot.lane.b32.xlu1 %v347_v22, %s1567_s27 }
  0x8d   : > { %535 = vrot.lane.b32.xlu0 %v417_v17, %s1573_s21 }
  0x8f   : > { %562 = vrot.lane.b32.xlu1 %v1780_v11, %s1575_s26 }
  0x91   : > { %361 = vrot.lane.b32.xlu0 %v348_v26, %s1567_s27 }
  0x93   : > { %566 = vrot.lane.b32.xlu1 %v1810_v19, %s1575_s26 }
  0x95   : > { %564 = vrot.lane.b32.xlu0 %v1776_v10, %s1575_s26 }
  0x97   : > { %365 = vrot.lane.b32.xlu1 %v350_v29, %s1567_s27 }
  0x99   : > { %363 = vrot.lane.b32.xlu0 %v349_v30, %s1567_s27 }
  0x9b   : > { %397 = vrot.lane.b32.xlu1 %v384_v31, %s1568_s12 }
  0x9d   : > { %395 = vrot.lane.b32.xlu0 %v1810_v19, %s1568_s12 }
  0x9f   : > { %401 = vrot.lane.b32.xlu1 %v386_v32, %s1568_s12 }
  0xa1   : > { %399 = vrot.lane.b32.xlu0 %v1837_v28, %s1568_s12 }
  0xa3   : > { %433 = vrot.lane.b32.xlu1 %v420_v33, %s1569_s9 }
  0xa5   : > { %431 = vrot.lane.b32.xlu0 %v419_v20, %s1569_s9 }
  0xa7   : > { %437 = vrot.lane.b32.xlu1 %v422_v34, %s1569_s9 }
  0xa9   : > { %435 = vrot.lane.b32.xlu0 %v421_v35, %s1569_s9 }
  0xab   : > { %460 = vrot.lane.b32.xlu1 %v1822_v23, %s1570_s24 }
  0xad   : > { %458 = vrot.lane.b32.xlu0 %v1810_v19, %s1570_s24 }
  0xaf   : > { %487 = vrot.lane.b32.xlu1 %v348_v26, %s1571_s25 }
  0xb1   : > { %485 = vrot.lane.b32.xlu0 %v347_v22, %s1571_s25 }
  0xb3   : > { %464 = vrot.lane.b32.xlu1 %v1832_v27, %s1570_s24 }
  0xb5   : > { %462 = vrot.lane.b32.xlu0 %v1837_v28, %s1570_s24 }
  0xb7   : > { %491 = vrot.lane.b32.xlu1 %v350_v29, %s1571_s25 }
  0xb9   : > { %489 = vrot.lane.b32.xlu0 %v349_v30, %s1571_s25 }
  0xbb   : > { %515 = vrot.lane.b32.xlu1 %v1837_v28, %s1572_s5 }
  0xbd   : > { %513 = vrot.lane.b32.xlu0 %v384_v31, %s1572_s5 }
  0xbf   : > { %519 = vrot.lane.b32.xlu1 %v1878_v36, %s1572_s5 }
  0xc1   : > { %517 = vrot.lane.b32.xlu0 %v386_v32, %s1572_s5 }
  0xc3   : > { %543 = vrot.lane.b32.xlu1 %v421_v35, %s1573_s21 }
  0xc5   : > { %541 = vrot.lane.b32.xlu0 %v420_v33, %s1573_s21 }
  0xc7   : > { %547 = vrot.lane.b32.xlu1 %v423_v37, %s1573_s21 }
  0xc9   : > { %545 = vrot.lane.b32.xlu0 %v422_v34, %s1573_s21 }
  0xcb   : > { %570 = vrot.lane.b32.xlu1 %v1837_v28, %s1575_s26 }
  0xcd   : > { %568 = vrot.lane.b32.xlu0 %v1822_v23, %s1575_s26 }
  0xcf   : > { %369 = vrot.lane.b32.xlu1 %v352_v39, %s1567_s27 }
  0xd1   : > { %367 = vrot.lane.b32.xlu0 %v351_v40, %s1567_s27  ;;  %s2195_s27 = scalar_lea.vmem [#allocation7], %s1297_s8 }
  0xd3   : > { %574 = vrot.lane.b32.xlu1 %v1878_v36, %s1575_s26 }
  0xd5   : > { %v354_v42 = vpop.permute.xlu1 %353  ;;  %572 = vrot.lane.b32.xlu0 %v1832_v27, %s1575_s26 }
  0xd7   : > { %v356_v43 = vpop.permute.xlu0 %355  ;;  %405 = vrot.lane.b32.xlu1 %v388_v41, %s1568_s12 }
  0xd8   : > { %v372_v55 = vsel %vm371_vm0, %v354_v42, %v356_v43 }
  0xd9   : > { %v392_v45 = vpop.permute.xlu1 %391  ;;  %403 = vrot.lane.b32.xlu0 %v1878_v36, %s1568_s12  ;;  %v592_v61 = vsel %vm589_vm3, %v1773_v7, %v372_v55  ;;  %s1314_s12 = sshll.u32 %s1554_s18, 9  ;;  %s1159_s18 = scalar_lea.sflag [#allocation4], %s1754_s13 }
  0xdb   : > { %v1909_v46 = vpop.permute.xlu0 %357  ;;  %441 = vrot.lane.b32.xlu1 %v424_v44, %s1569_s9 }
  0xdc   : > { %v373_v49 = vsel %vm371_vm0, %v356_v43, %v1909_v46 }
  0xdd   : > { %v390_v47 = vpop.permute.xlu1 %389  ;;  %439 = vrot.lane.b32.xlu0 %v423_v37, %s1569_s9  ;;  %v595_v52 = vsel %vm589_vm3, %v1780_v11, %v373_v49  ;;  %s1175_s9 = sshll.u32 %s2195_s27, 4  ;;  %s2223_s9 = int_to_ptr.vmem [resolvable:$true] %s1175_s9 }
  0xde   : > { %v408_v58 = vsel %vm407_vm1, %v390_v47, %v392_v45  ;;  %v1990_v47 = vld [vmem:[%s2273_s2] sm:$0x3f]  }
  0xdf   : > { %v1913_v48 = vpop.permute.xlu0 %393  ;;  %468 = vrot.lane.b32.xlu1 %v1889_v38, %s1570_s24  ;;  %v619_v1 = vsel %vm617_vm5, %v592_v61, %v408_v58 }
  0xe0   : > { %v409_v50 = vsel %vm407_vm1, %v392_v45, %v1913_v48 }
  0xe1   : > { %v1921_v51 = vpop.permute.xlu1 %429  ;;  %466 = vrot.lane.b32.xlu0 %v1878_v36, %s1570_s24  ;;  %v621_v57 = vsel %vm617_vm5, %v595_v52, %v409_v50 }
  0xe3   : > { %v428_v53 = vpop.permute.xlu0 %427  ;;  %495 = vrot.lane.b32.xlu1 %v352_v39, %s1571_s25 }
  0xe4   : > { %v445_v56 = vsel %vm443_vm2, %v428_v53, %v1921_v51 }
  0xe5   : > { %v455_v59 = vpop.permute.xlu1 %454  ;;  %493 = vrot.lane.b32.xlu0 %v351_v40, %s1571_s25  ;;  %v641_v60 = vsel %vm636_vm4, %v621_v57, %v445_v56 }
  0xe6   : > { %774 = vmatprep.subr.bf16.mxu0 %v641_v60 }
  0xe7   : > { %v426_v62 = vpop.permute.xlu0 %425  ;;  %523 = vrot.lane.b32.xlu1 %v343_v54, %s1572_s5 }
  0xe8   : > { %v444_v0 = vsel %vm443_vm2, %v426_v62, %v428_v53 }
  0xe9   : > { %v482_v2 = vpop.permute.xlu1 %481  ;;  %521 = vrot.lane.b32.xlu0 %v388_v41, %s1572_s5  ;;  %v638_v3 = vsel %vm636_vm4, %v619_v1, %v444_v0  ;;  %s2221_s5 = scalar_lea.hbm %s2275_s4, %s1314_s12 }
  0xea   : > { %775 = vmatpush1.bf16.msra.mxu0 %v638_v3 }
  0xeb   : > { %v1944_v4 = vpop.permute.xlu0 %456  ;;  %551 = vrot.lane.b32.xlu1 %v534_v63, %s1573_s21 }
  0xec   : > { %v472_v16 = vsel %vm470_vm7, %v455_v59, %v1944_v4 }
  0xed   : > { %v453_v5 = vpop.permute.xlu1 %452  ;;  %549 = vrot.lane.b32.xlu0 %v424_v44, %s1573_s21  ;;  %s1476_s21 = scalar_lea.vmem %s2223_s9, 512 }
  0xee   : > { %v471_v21 = vsel %vm470_vm7, %v453_v5, %v455_v59  ;;  %p1477_p0 = scmp.ne.s32.totalorder %s2223_s9, %s1476_s21 }
  0xef   : > { %v1948_v6 = vpop.permute.xlu0 %483  ;;  %578 = vrot.lane.b32.xlu1 %v343_v54, %s1575_s26 }
  0xf0   : > { %v499_v13 = vsel %vm497_vm6, %v482_v2, %v1948_v6  ;;  %p1478_p11 = pnand %p1477_p0, %p2287_p3 }
  0xf1   : > { %v510_v7 = vpop.permute.xlu1 %509  ;;  %576 = vrot.lane.b32.xlu0 %v1889_v38, %s1575_s26  ;;  %v669_v18 = vsel %vm589_vm3, %v472_v16, %v499_v13  ;;  %s1580_s26 = smov [#allocation7]  }
  0xf2   : > { %p1479_p6 = pneg %p1478_p11  ;;  %s1480_s11 = sshll.u32 %s1580_s26, 4  ;;  %s1481_s11 = int_to_ptr.vmem [resolvable:$false] %s1480_s11 }
  0xf3   : > { %v480_v9 = vpop.permute.xlu0 %479  ;;  %s1482_s7 = scalar_lea.vmem %s1481_s11, 1024  ;;  %p1483_p7 = scmp.lt.s32.totalorder %s2223_s9, %s1481_s11 }
  0xf4   : > { %v498_v17 = vsel %vm497_vm6, %v480_v9, %v482_v2  ;;  %p1484_p10 = scmp.lt.s32.totalorder %s1482_s7, %s1476_s21 }
  0xf5   : > { %v508_v11 = vpop.permute.xlu1 %507  ;;  %990 = vperm.xlu0 %1411, %v987_v8   ;;  %v666_v26 = vsel %vm589_vm3, %v471_v21, %v498_v17 }
  0xf6   : > { %v526_v29 = vsel %vm525_vm8, %v508_v11, %v510_v7  ;;  %p1485_p12 = por %p1484_p10, %p1483_p7 }
  0xf7   : > { %v1956_v12 = vpop.permute.xlu0 %511  ;;  %v692_v34 = vsel %vm617_vm5, %v666_v26, %v526_v29 }
  0xf8   : > { %v527_v14 = vsel %vm525_vm8, %v510_v7, %v1956_v12  ;;  %p1486_p9 = pnand %p1485_p12, %p1479_p6 }
  0xf9   : > { %v1962_v15 = vpop.permute.xlu1 %539  ;;  %v694_v24 = vsel %vm617_vm5, %v669_v18, %v527_v14 }
  0xfb   : > { %v538_v20 = vpop.permute.xlu0 %537 }
  0xfc   : > { %v555_v22 = vsel %vm553_vm9, %v538_v20, %v1962_v15 }
  0xfd   : > { %v360_v30 = vpop.permute.xlu1 %359  ;;  %v713_v31 = vsel %vm636_vm4, %v694_v24, %v555_v22 }
  0xfe   : > { %776 = vmatprep.subr.bf16.mxu0 %v713_v31  ;;  %v374_v55 = vsel %vm371_vm0, %v1909_v46, %v360_v30 }
  0xff   : > { %v536_v32 = vpop.permute.xlu0 %535  ;;  %v598_v60 = vsel %vm589_vm3, %v1776_v10, %v374_v55 }
 0x100   : > { %v554_v33 = vsel %vm553_vm9, %v536_v32, %v538_v20 }
 0x101   : > { %v563_v35 = vpop.permute.xlu1 %562  ;;  %v710_v37 = vsel %vm636_vm4, %v692_v34, %v554_v33 }
 0x102   : > { %777 = vmatpush1.bf16.msra.mxu0 %v710_v37 }
 0x103   : > { %v362_v39 = vpop.permute.xlu0 %361 }
 0x104   : > { %v375_v56 = vsel %vm371_vm0, %v360_v30, %v362_v39 }
 0x105   : > { %v1978_v40 = vpop.permute.xlu1 %566  ;;  %v601_v61 = vsel %vm589_vm3, %v1810_v19, %v375_v56 }
 0x107   : > { %v565_v41 = vpop.permute.xlu0 %564 }
 0x108   : > { %v581_v42 = vsel %vm580_vm10, %v563_v35, %v565_v41  ;;  %v582_v43 = vsel %vm580_vm10, %v565_v41, %v1978_v40 }
 0x109   : > { %1300 = vmatprep.subr.msk.bf16.mxu0 %vm589_vm3, %v582_v43  ;;  %v1984_v44 = vpop.permute.xlu1 %365  ;;  %v748_v45 = vsel %vm589_vm3, %v581_v42, 0 }
 0x10a   : > { %779 = vmatpush1.bf16.msra.mxu0 %v748_v45 }
 0x10b   : > { %v364_v49 = vpop.permute.xlu0 %363 }
 0x10c   : > { %v376_v62 = vsel %vm371_vm0, %v362_v39, %v364_v49  ;;  %v377_v63 = vsel %vm371_vm0, %v364_v49, %v1984_v44 }
 0x10d   : > { %1301 = vmatmul.mubr.msk.bf16.vlgmr.msra.gmra.mrb[0].mxu0 %vm580_vm10, %v1990_v47  ;;  %v398_v50 = vpop.permute.xlu1 %397  ;;  %v607_v8 = vsel %vm589_vm3, %v1837_v28, %v377_v63 }
 0x10e   : > { %892 = vmatprep.mubr.bf16.mxu0 %v1574_v25 }
 0x10f   : > { %v396_v52 = vpop.permute.xlu0 %395 }
 0x110   : > { %v410_v57 = vsel %vm407_vm1, %v1913_v48, %v396_v52  ;;  %v411_v58 = vsel %vm407_vm1, %v396_v52, %v398_v50 }
 0x111   : > { %v1995_v53 = vpop.permute.xlu1 %401  ;;  %v625_v1 = vsel %vm617_vm5, %v601_v61, %v411_v58  ;;  %v623_v2 = vsel %vm617_vm5, %v598_v60, %v410_v57 }
 0x113   : > { %v400_v54 = vpop.permute.xlu0 %399 }
 0x114   : > { %v412_v10 = vsel %vm407_vm1, %v398_v50, %v400_v54  ;;  %v413_v19 = vsel %vm407_vm1, %v400_v54, %v1995_v53 }
 0x115   : > { %v434_v59 = vpop.permute.xlu1 %433  ;;  %v629_v16 = vsel %vm617_vm5, %v607_v8, %v413_v19 }
 0x117   : > { %v432_v46 = vpop.permute.xlu0 %431 }
 0x118   : > { %v446_v0 = vsel %vm443_vm2, %v1921_v51, %v432_v46  ;;  %v447_v48 = vsel %vm443_vm2, %v432_v46, %v434_v59  ;;  %v604_v51 = vsel %vm589_vm3, %v1822_v23, %v376_v62 }
 0x119   : > { %v2018_v3 = vpop.permute.xlu1 %437  ;;  %v647_v5 = vsel %vm636_vm4, %v625_v1, %v447_v48  ;;  %v644_v7 = vsel %vm636_vm4, %v623_v2, %v446_v0  ;;  %v627_v11 = vsel %vm617_vm5, %v604_v51, %v412_v10 }
 0x11a   : > { %817 = vmatprep.subr.bf16.mxu1 %v647_v5 }
 0x11b   : > { %v436_v9 = vpop.permute.xlu0 %435  ;;  %818 = vmatpush1.bf16.msra.mxu1 %v644_v7 }
 0x11c   : > { %v448_v13 = vsel %vm443_vm2, %v434_v59, %v436_v9  ;;  %v449_v14 = vsel %vm443_vm2, %v436_v9, %v2018_v3 }
 0x11d   : > { %v461_v17 = vpop.permute.xlu1 %460  ;;  %v653_v18 = vsel %vm636_vm4, %v629_v16, %v449_v14  ;;  %v650_v20 = vsel %vm636_vm4, %v627_v11, %v448_v13 }
 0x11e   : > { %860 = vmatprep.subr.bf16.mxu0 %v653_v18 }
 0x11f   : > { %v459_v23 = vpop.permute.xlu0 %458  ;;  %861 = vmatpush1.bf16.msra.mxu0 %v650_v20 }
 0x120   : > { %v473_v22 = vsel %vm470_vm7, %v1944_v4, %v459_v23  ;;  %v474_v43 = vsel %vm470_vm7, %v459_v23, %v461_v17 }
 0x121   : > { %v488_v28 = vpop.permute.xlu1 %487 }
 0x123   : > { %v486_v21 = vpop.permute.xlu0 %485 }
 0x124   : > { %v500_v24 = vsel %vm497_vm6, %v1948_v6, %v486_v21  ;;  %v501_v6 = vsel %vm497_vm6, %v486_v21, %v488_v28 }
 0x125   : > { %v672_v26 = vsel %vm589_vm3, %v473_v22, %v500_v24  ;;  %v2038_v29 = vpop.permute.xlu1 %464  ;;  %v675_v45 = vsel %vm589_vm3, %v474_v43, %v501_v6 }
 0x127   : > { %v463_v30 = vpop.permute.xlu0 %462 }
 0x128   : > { %v475_v61 = vsel %vm470_vm7, %v461_v17, %v463_v30 }
 0x129   : > { %v2040_v31 = vpop.permute.xlu1 %491 }
 0x12b   : > { %v490_v32 = vpop.permute.xlu0 %489 }
 0x12c   : > { %v502_v49 = vsel %vm497_vm6, %v488_v28, %v490_v32  ;;  %v1576_v28 = vmov 0.0  }
 0x12d   : > { %v516_v33 = vpop.permute.xlu1 %515  ;;  %v678_v62 = vsel %vm589_vm3, %v475_v61, %v502_v49 }
 0x12f   : > { %v514_v34 = vpop.permute.xlu0 %513 }
 0x130   : > { %v528_v35 = vsel %vm525_vm8, %v1956_v12, %v514_v34  ;;  %v529_v41 = vsel %vm525_vm8, %v514_v34, %v516_v33  ;;  %v503_v12 = vsel %vm497_vm6, %v490_v32, %v2040_v31 }
 0x131   : > { %v2044_v37 = vpop.permute.xlu1 %519  ;;  %v696_v4 = vsel %vm617_vm5, %v672_v26, %v528_v35  ;;  %v698_v55 = vsel %vm617_vm5, %v675_v45, %v529_v41 }
 0x133   : > { %v518_v39 = vpop.permute.xlu0 %517 }
 0x134   : > { %v530_v56 = vsel %vm525_vm8, %v516_v33, %v518_v39  ;;  %v531_v57 = vsel %vm525_vm8, %v518_v39, %v2044_v37 }
 0x135   : > { %v544_v42 = vpop.permute.xlu1 %543  ;;  %v700_v0 = vsel %vm617_vm5, %v678_v62, %v530_v56 }
 0x137   : > { %v542_v50 = vpop.permute.xlu0 %541 }
 0x138   : > { %v556_v52 = vsel %vm553_vm9, %v1962_v15, %v542_v50  ;;  %v557_v54 = vsel %vm553_vm9, %v542_v50, %v544_v42  ;;  %v476_v15 = vsel %vm470_vm7, %v463_v30, %v2038_v29 }
 0x139   : > { %v2061_v58 = vpop.permute.xlu1 %547  ;;  %v719_v59 = vsel %vm636_vm4, %v698_v55, %v557_v54  ;;  %v716_v60 = vsel %vm636_vm4, %v696_v4, %v556_v52  ;;  %v681_v63 = vsel %vm589_vm3, %v476_v15, %v503_v12 }
 0x13a   : > { %819 = vmatprep.subr.bf16.mxu1 %v719_v59  ;;  %v702_v2 = vsel %vm617_vm5, %v681_v63, %v531_v57 }
 0x13b   : > { %v546_v46 = vpop.permute.xlu0 %545  ;;  %820 = vmatpush1.bf16.msra.mxu1 %v716_v60 }
 0x13c   : > { %v558_v48 = vsel %vm553_vm9, %v544_v42, %v546_v46  ;;  %v559_v1 = vsel %vm553_vm9, %v546_v46, %v2061_v58 }
 0x13d   : > { %v571_v10 = vpop.permute.xlu1 %570  ;;  %v725_v19 = vsel %vm636_vm4, %v702_v2, %v559_v1  ;;  %v722_v5 = vsel %vm636_vm4, %v700_v0, %v558_v48 }
 0x13e   : > { %862 = vmatprep.subr.bf16.mxu0 %v725_v19 }
 0x13f   : > { %v569_v7 = vpop.permute.xlu0 %568  ;;  %863 = vmatpush1.bf16.msra.mxu0 %v722_v5 }
 0x140   : > { %v583_v51 = vsel %vm580_vm10, %v1978_v40, %v569_v7  ;;  %v584_v8 = vsel %vm580_vm10, %v569_v7, %v571_v10 }
 0x141   : > { %1302 = vmatprep.subr.msk.bf16.mxu1 %vm589_vm3, %v584_v8  ;;  %v370_v9 = vpop.permute.xlu1 %369  ;;  %v754_v11 = vsel %vm589_vm3, %v583_v51, 0 }
 0x142   : > { %822 = vmatpush1.bf16.msra.mxu1 %v754_v11  ;;  %v616_v21 = vsel %vm589_vm3, %v1889_v38, %v370_v9 }
 0x143   : > { %v368_v13 = vpop.permute.xlu0 %367 }
 0x144   : > { %v379_v22 = vsel %vm371_vm0, %v368_v13, %v370_v9 }
 0x145   : > { %1303 = vmatmul.mubr.msk.bf16.vlgmr.msra.gmra.mrb[0].mxu1 %vm580_vm10, %v1990_v47  ;;  %v2084_v14 = vpop.permute.xlu1 %574 }
 0x146   : > { %935 = vmatprep.mubr.bf16.mxu1 %v1574_v25  ;;  %v378_v25 = vsel %vm371_vm0, %v1984_v44, %v368_v13  ;;  %v613_v44 = vsel %vm589_vm3, %v1878_v36, %v379_v22 }
 0x147   : > { %v573_v16 = vpop.permute.xlu0 %572  ;;  %v610_v38 = vsel %vm589_vm3, %v1832_v27, %v378_v25 }
 0x148   : > { %v585_v17 = vsel %vm580_vm10, %v571_v10, %v573_v16  ;;  %v586_v40 = vsel %vm580_vm10, %v573_v16, %v2084_v14 }
 0x149   : > { %v760_v18 = vsel %vm589_vm3, %v585_v17, 0  ;;  %1304 = vmatprep.subr.msk.bf16.mxu0 %vm589_vm3, %v586_v40  ;;  %v406_v20 = vpop.permute.xlu1 %405 }
 0x14a   : > { %865 = vmatpush1.bf16.msra.mxu0 %v760_v18  ;;  %v635_v24 = vsel %vm617_vm5, %v616_v21, %v406_v20 }
 0x14b   : > { %v404_v23 = vpop.permute.xlu0 %403  ;;  %1319 = vmatprep.subr.bf16.mxu0 %v1576_v28 }
 0x14c   : > { %v414_v26 = vsel %vm407_vm1, %v1995_v53, %v404_v23  ;;  %v415_v30 = vsel %vm407_vm1, %v404_v23, %v406_v20 }
 0x14d   : > { %1305 = vmatmul.mubr.msk.bf16.vlgmr.msra.gmra.mrb[4].mxu0 %vm580_vm10, %v1990_v47  ;;  %v442_v32 = vpop.permute.xlu1 %441  ;;  %v631_v53 = vsel %vm617_vm5, %v610_v38, %v414_v26  ;;  %v633_v39 = vsel %vm617_vm5, %v613_v44, %v415_v30 }
 0x14e   : > { %v662_v33 = vsel %vm636_vm4, %v635_v24, %v442_v32  ;;  %1325 = vmatprep.mubr.msk.bf16.mxu0 %vm1577_vm11, %v1576_v28 }
 0x14f   : > { %v440_v34 = vpop.permute.xlu0 %439  ;;  %1320 = vmatpush3.bf16.msra.mxu0 %v662_v33 }
 0x150   : > { %v450_v35 = vsel %vm443_vm2, %v2018_v3, %v440_v34  ;;  %v451_v4 = vsel %vm443_vm2, %v440_v34, %v442_v32  ;;  %1321 = vmatprep.subr.bf16.mxu0 %v1576_v28 }
 0x151   : > { %v469_v6 = vpop.permute.xlu1 %468  ;;  %v659_v41 = vsel %vm636_vm4, %v633_v39, %v451_v4  ;;  %v656_v27 = vsel %vm636_vm4, %v631_v53, %v450_v35 }
 0x152   : > { %903 = vmatprep.subr.bf16.mxu1 %v659_v41 }
 0x153   : > { %v467_v42 = vpop.permute.xlu0 %466  ;;  %904 = vmatpush1.bf16.msra.mxu1 %v656_v27 }
 0x154   : > { %v477_v57 = vsel %vm470_vm7, %v2038_v29, %v467_v42  ;;  %v478_v59 = vsel %vm470_vm7, %v467_v42, %v469_v6 }
 0x155   : > { %v496_v36 = vpop.permute.xlu1 %495 }
 0x156   : > { %v690_v50 = vsel %vm589_vm3, %v469_v6, %v496_v36 }
 0x157   : > { %v494_v43 = vpop.permute.xlu0 %493 }
 0x158   : > { %v504_v3 = vsel %vm497_vm6, %v2040_v31, %v494_v43  ;;  %v505_v12 = vsel %vm497_vm6, %v494_v43, %v496_v36 }
 0x159   : > { %v524_v45 = vpop.permute.xlu1 %523  ;;  %v684_v61 = vsel %vm589_vm3, %v477_v57, %v504_v3  ;;  %v687_v31 = vsel %vm589_vm3, %v478_v59, %v505_v12 }
 0x15a   : > { %v708_v52 = vsel %vm617_vm5, %v690_v50, %v524_v45 }
 0x15b   : > { %v522_v49 = vpop.permute.xlu0 %521 }
 0x15c   : > { %v532_v54 = vsel %vm525_vm8, %v2044_v37, %v522_v49  ;;  %v533_v55 = vsel %vm525_vm8, %v522_v49, %v524_v45 }
 0x15d   : > { %v552_v56 = vpop.permute.xlu1 %551  ;;  %v704_v62 = vsel %vm617_vm5, %v684_v61, %v532_v54  ;;  %v706_v46 = vsel %vm617_vm5, %v687_v31, %v533_v55 }
 0x15e   : > { %v734_v60 = vsel %vm636_vm4, %v708_v52, %v552_v56 }
 0x15f   : > { %v550_v15 = vpop.permute.xlu0 %549  ;;  %1322 = vmatpush3.bf16.msra.mxu0 %v734_v60 }
 0x160   : > { %v560_v37 = vsel %vm553_vm9, %v2061_v58, %v550_v15  ;;  %v561_v63 = vsel %vm553_vm9, %v550_v15, %v552_v56  ;;  %1323 = vmatprep.subr.bf16.mxu0 %v1576_v28 }
 0x161   : > { %v731_v29 = vsel %vm636_vm4, %v706_v46, %v561_v63  ;;  %v728_v0 = vsel %vm636_vm4, %v704_v62, %v560_v37  ;;  %v579_v48 = vpop.permute.xlu1 %578 }
 0x162   : > { %905 = vmatprep.subr.bf16.mxu1 %v731_v29  ;;  %v772_v1 = vsel %vm589_vm3, %v579_v48, 0 }
 0x163   : > { %v577_v2 = vpop.permute.xlu0 %576  ;;  %906 = vmatpush1.bf16.msra.mxu1 %v728_v0  ;;  %1324 = vmatpush3.bf16.msra.mxu0 %v772_v1 }
 0x164   : > { %v587_v10 = vsel %vm580_vm10, %v2084_v14, %v577_v2  ;;  %v588_v58 = vsel %vm580_vm10, %v577_v2, %v579_v48 }
 0x165   : > { %v766_v19 = vsel %vm589_vm3, %v587_v10, 0  ;;  %1306 = vmatprep.subr.msk.bf16.mxu1 %vm589_vm3, %v588_v58 }
 0x166   : > { %1326 = vmatmul.mubr.msk.bf16.vlgmr.msra.gmra.mrb[8].mxu0 %vm580_vm10, %v1990_v47 }
 0x167   : > { %908 = vmatpush1.bf16.msra.mxu1 %v766_v19 }
 0x16a   : > { %1307 = vmatmul.mubr.msk.bf16.vlgmr.msra.gmra.mrb[4].mxu1 %vm580_vm10, %v1990_v47 }
 0x174   : > { %v2179_v6 = vpop.permute.xlu0 %990 }
 0x1e0   : > { %v808_v5 = vpop.f32.mrb[0].mxu0 }
 0x1e1   : > { %v1010_v7 = vrot.slane %v808_v5, 4  ;;  %v810_v51 = vpop.f32.mrb[1].mxu0  ;;  %v993_v42 = vadd.f32 %v2179_v6, %v808_v5 }
 0x1e2   : > { %v812_v8 = vpop.f32.mrb[2].mxu0  ;;  %v1011_v11 = vrot.slane %v810_v51, 4  ;;  %v994_v50 = vadd.f32 %v2179_v6, %v810_v51 }
 0x1e3   : > { %1019 = vrot.lane.b32.xlu1 %v1010_v7, %s1578_s10  ;;  %v814_v9 = vpop.f32.mrb[3].mxu0 }
 0x1e4   : > { %1073 = vrot.lane.b32.xlu0 %v814_v9, %s1579_s6 }
 0x1e7   : > { %1071 = vrot.lane.b32.xlu1 %v812_v8, %s1579_s6 }
 0x1eb   : > { %1021 = vrot.lane.b32.xlu1 %v1011_v11, %s1578_s10 }
 0x218   : > { %v851_v13 = vpop.f32.mrb[0].mxu1 }
 0x219   : > { %v1012_v14 = vrot.slane %v851_v13, 4  ;;  %v2150_v16 = vpop.f32.mrb[1].mxu1  ;;  %v995_v60 = vadd.f32 %v2179_v6, %v851_v13 }
 0x21a   : > { %v855_v47 = vpop.f32.mrb[2].mxu1  ;;  %v1013_v17 = vrot.slane %v2150_v16, 4  ;;  %v996_v0 = vadd.f32 %v2179_v6, %v2150_v16 }
 0x21b   : > { %1023 = vrot.lane.b32.xlu0 %v1012_v14, %s1578_s10  ;;  %1075 = vrot.lane.b32.xlu1 %v855_v47, %s1579_s6  ;;  %v857_v40 = vpop.f32.mrb[3].mxu1 }
 0x21f   : > { %1025 = vrot.lane.b32.xlu1 %v1013_v17, %s1578_s10  ;;  %1077 = vrot.lane.b32.xlu0 %v857_v40, %s1579_s6 }
 0x220   : > { %v2157_v18 = vpop.f32.mrb[4].mxu0 }
 0x221   : > { %v1014_v20 = vrot.slane %v2157_v18, 4  ;;  %v2160_v23 = vpop.f32.mrb[5].mxu0  ;;  %v997_v16 = vadd.f32 %v2179_v6, %v2157_v18 }
 0x222   : > { %v898_v28 = vpop.f32.mrb[6].mxu0  ;;  %v1015_v21 = vrot.slane %v2160_v23, 4 }
 0x223   : > { %1027 = vrot.lane.b32.xlu0 %v1014_v20, %s1578_s10  ;;  %1079 = vrot.lane.b32.xlu1 %v898_v28, %s1579_s6  ;;  %v900_v25 = vpop.f32.mrb[7].mxu0  ;;  %v998_v20 = vadd.f32 %v2179_v6, %v2160_v23 }
 0x227   : > { %1029 = vrot.lane.b32.xlu1 %v1015_v21, %s1578_s10  ;;  %1081 = vrot.lane.b32.xlu0 %v900_v25, %s1579_s6 }
 0x239   : > { %v980_v22 = vpop.f32.mrb[8].mxu0 }
 0x23a   : > { %v1327_v24 = vpop.f32.mrb[9].mxu0  ;;  %v1018_v34 = vrot.slane %v980_v22, 4 }
 0x23b   : > { %v983_v26 = vpop.f32.mrb[10].mxu0 }
 0x23c   : > { %v1328_v30 = vpop.f32.mrb[11].mxu0 }
 0x23d   : > { %v2167_v32 = vpop.f32.mrb[4].mxu1 }
 0x23e   : > { %v1016_v33 = vrot.slane %v2167_v32, 4  ;;  %v2170_v38 = vpop.f32.mrb[5].mxu1  ;;  %v999_v23 = vadd.f32 %v2179_v6, %v2167_v32 }
 0x23f   : > { %v941_v44 = vpop.f32.mrb[6].mxu1  ;;  %v1017_v35 = vrot.slane %v2170_v38, 4 }
 0x240   : > { %1031 = vrot.lane.b32.xlu0 %v1016_v33, %s1578_s10  ;;  %1083 = vrot.lane.b32.xlu1 %v941_v44, %s1579_s6  ;;  %v943_v53 = vpop.f32.mrb[7].mxu1 }
 0x244   : > { %1035 = vrot.lane.b32.xlu0 %v1018_v34, %s1578_s10  ;;  %1033 = vrot.lane.b32.xlu1 %v1017_v35, %s1578_s10  ;;  %v1000_v35 = vadd.f32 %v2179_v6, %v2170_v38 }
 0x248   : > { %1087 = vrot.lane.b32.xlu1 %v983_v26, %s1579_s6  ;;  %1085 = vrot.lane.b32.xlu0 %v943_v53, %s1579_s6 }
 0x255   : > { %v1020_v4 = vpop.permute.xlu1 %1019 }
 0x256   : > { %v1074_v36 = vpop.permute.xlu0 %1073 }
 0x259   : > { %v1072_v39 = vpop.permute.xlu1 %1071 }
 0x25a   : > { %v1090_v45 = vsel %vm1089_vm13, %v1072_v39, %v1074_v36 }
 0x25d   : > { %v1022_v41 = vpop.permute.xlu1 %1021 }
 0x25e   : > { %v1038_v27 = vsel %vm1037_vm12, %v1020_v4, %v1022_v41 }
 0x25f   : > { %v1054_v43 = vadd.f32 %v1038_v27, %v993_v42 }
 0x261   : > { %v1106_v49 = vadd.f32 %v1090_v45, %v1054_v43 }
 0x263   : > { %v1122_v56 = vmul.f32 0.01, %v1106_v49  ;;  %vm1114_vm14 = vcmp.ge.f32.partialorder %v1106_v49, 0.0 }
 0x265   : > { %v1130_v63 = vsel %vm1114_vm14, %v1106_v49, %v1122_v56 }
 0x28d   : > { %v1024_v3 = vpop.permute.xlu0 %1023  ;;  %v1076_v12 = vpop.permute.xlu1 %1075 }
 0x28e   : > { %v1039_v52 = vsel %vm1037_vm12, %v1022_v41, %v1024_v3  ;;  %v1091_v54 = vsel %vm1089_vm13, %v1074_v36, %v1076_v12 }
 0x28f   : > { %v1055_v55 = vadd.f32 %v1039_v52, %v994_v50 }
 0x291   : > { %v1107_v57 = vadd.f32 %v1091_v54, %v1055_v55  ;;  %v1078_v59 = vpop.permute.xlu0 %1077  ;;  %v1026_v61 = vpop.permute.xlu1 %1025 }
 0x292   : > { %v1092_v31 = vsel %vm1089_vm13, %v1076_v12, %v1078_v59  ;;  %v1040_v15 = vsel %vm1037_vm12, %v1024_v3, %v1026_v61 }
 0x293   : > { %vm1115_vm15 = vcmp.ge.f32.partialorder %v1107_v57, 0.0  ;;  %v1123_v62 = vmul.f32 0.01, %v1107_v57  ;;  %v1056_v37 = vadd.f32 %v1040_v15, %v995_v60 }
 0x295   : > { %v1131_v46 = vsel %vm1115_vm15, %v1107_v57, %v1123_v62  ;;  %v1108_v29 = vadd.f32 %v1092_v31, %v1056_v37  ;;  %v1028_v48 = vpop.permute.xlu0 %1027  ;;  %v1080_v1 = vpop.permute.xlu1 %1079 }
 0x296   : > { %v1146_v2 = vcombine.low %v1130_v63, %v1131_v46  ;;  %v1041_v10 = vsel %vm1037_vm12, %v1026_v61, %v1028_v48  ;;  %v1093_v58 = vsel %vm1089_vm13, %v1078_v59, %v1080_v1 }
 0x297   : > { %v1057_v19 = vadd.f32 %v1041_v10, %v996_v0  ;;  %v1124_v5 = vmul.f32 0.01, %v1108_v29  ;;  %vm1116_vm0 = vcmp.ge.f32.partialorder %v1108_v29, 0.0 }
 0x298   : > { %1154 = vst [vmem:[%s2195_s27] sm:$0xff] %v1146_v2 }
 0x299   : > { %v1109_v7 = vadd.f32 %v1093_v58, %v1057_v19  ;;  %v1132_v8 = vsel %vm1116_vm0, %v1108_v29, %v1124_v5  ;;  %v1030_v13 = vpop.permute.xlu1 %1029  ;;  %v1082_v47 = vpop.permute.xlu0 %1081 }
 0x29a   : > { %v1042_v14 = vsel %vm1037_vm12, %v1028_v48, %v1030_v13  ;;  %v1094_v40 = vsel %vm1089_vm13, %v1080_v1, %v1082_v47 }
 0x29b   : > { %vm1117_vm1 = vcmp.ge.f32.partialorder %v1109_v7, 0.0  ;;  %v1125_v51 = vmul.f32 0.01, %v1109_v7  ;;  %v1058_v17 = vadd.f32 %v1042_v14, %v997_v16 }
 0x29d   : > { %v1133_v9 = vsel %vm1117_vm1, %v1109_v7, %v1125_v51  ;;  %v1110_v28 = vadd.f32 %v1094_v40, %v1058_v17 }
 0x29e   : > { %v1147_v11 = vcombine.low %v1132_v8, %v1133_v9 }
 0x29f   : > { %v1126_v30 = vmul.f32 0.01, %v1110_v28  ;;  %vm1118_vm2 = vcmp.ge.f32.partialorder %v1110_v28, 0.0 }
 0x2a0   : > { %1155 = vst [vmem:[%s2195_s27 + $0x8] sm:$0xff] %v1147_v11 }
 0x2a1   : > { %v1134_v39 = vsel %vm1118_vm2, %v1110_v28, %v1126_v30 }
 0x2b2   : > { %v1032_v21 = vpop.permute.xlu0 %1031  ;;  %v1084_v25 = vpop.permute.xlu1 %1083 }
 0x2b3   : > { %v1043_v22 = vsel %vm1037_vm12, %v1030_v13, %v1032_v21  ;;  %v1095_v26 = vsel %vm1089_vm13, %v1082_v47, %v1084_v25 }
 0x2b4   : > { %v1059_v24 = vadd.f32 %v1043_v22, %v998_v20 }
 0x2b6   : > { %v1111_v33 = vadd.f32 %v1095_v26, %v1059_v24  ;;  %v1036_v44 = vpop.permute.xlu0 %1035  ;;  %v1034_v34 = vpop.permute.xlu1 %1033 }
 0x2b7   : > { %v1044_v18 = vsel %vm1037_vm12, %v1032_v21, %v1034_v34  ;;  %v1045_v53 = vsel %vm1037_vm12, %v1034_v34, %v1036_v44 }
 0x2b8   : > { %vm1119_vm3 = vcmp.ge.f32.partialorder %v1111_v33, 0.0  ;;  %v1127_v4 = vmul.f32 0.01, %v1111_v33  ;;  %v1060_v27 = vadd.f32 %v1044_v18, %v999_v23  ;;  %v1061_v42 = vadd.f32 %v1045_v53, %v1000_v35 }
 0x2ba   : > { %v1135_v41 = vsel %vm1119_vm3, %v1111_v33, %v1127_v4  ;;  %v1086_v36 = vpop.permute.xlu0 %1085  ;;  %v1088_v43 = vpop.permute.xlu1 %1087 }
 0x2bb   : > { %v1148_v45 = vcombine.low %v1134_v39, %v1135_v41  ;;  %v1096_v49 = vsel %vm1089_vm13, %v1084_v25, %v1086_v36  ;;  %v1097_v50 = vsel %vm1089_vm13, %v1086_v36, %v1088_v43 }
 0x2bc   : > { %v1112_v32 = vadd.f32 %v1096_v49, %v1060_v27  ;;  %v1113_v3 = vadd.f32 %v1097_v50, %v1061_v42 }
 0x2bd   : > { %1156 = vst [vmem:[%s2195_s27 + $0x10] sm:$0xff] %v1148_v45 }
 0x2be   : > { %vm1120_vm4 = vcmp.ge.f32.partialorder %v1112_v32, 0.0  ;;  %v1128_v38 = vmul.f32 0.01, %v1112_v32  ;;  %vm1121_vm5 = vcmp.ge.f32.partialorder %v1113_v3, 0.0  ;;  %v1129_v6 = vmul.f32 0.01, %v1113_v3 }
 0x2c0   : > { %v1136_v12 = vsel %vm1120_vm4, %v1112_v32, %v1128_v38  ;;  %v1137_v52 = vsel %vm1121_vm5, %v1113_v3, %v1129_v6 }
 0x2c1   : > { %v1149_v54 = vcombine.low %v1136_v12, %v1137_v52 }
 0x2c3   : > { %1157 = vst [vmem:[%s2195_s27 + $0x18] sm:$0xff] %v1149_v54 }
 0x2c4   : > { %1489 = shalt.err (!%p1486_p9)
}
 0x2c5   : > { %s1490_s13 = scalar_lea.hbm %s2221_s5, 512  ;;  %s1494_s10 = scalar_lea.hbm %s2275_s4, 1024 }
 0x2c6   : > { %p1491_p1 = scmp.ne.s32.totalorder %s2221_s5, %s1490_s13  ;;  %p1495_p4 = scmp.lt.u32.totalorder %s2221_s5, %s2275_s4 }
 0x2c7   : > { %p1496_p13 = scmp.lt.u32.totalorder %s1494_s10, %s1490_s13  ;;  %p1498_p0 = scmp.lt.u32.totalorder %s1490_s13, %s2221_s5 }
 0x2c8   : > { %p1492_p5 = pnand %p1491_p1, %p2287_p3 }
 0x2c9   : > { %p1497_p8 = por %p1496_p13, %p1495_p4 }
 0x2ca   : > { %p1493_p2 = pneg %p1492_p5 }
 0x2cb   : > { %p1499_p11 = por %p1498_p0, %p1497_p8 }
 0x2cd   : > { %p1500_p6 = pnand %p1499_p11, %p1493_p2 }
 0x2cf   : > { %1503 = shalt.err (!%p1500_p6)
}
 0x2d0   : > { %1334 = dma.vmem_to_hbm [thread:$0]  (%p2287_p3), %s2223_s9, 512, %s2221_s5, %s1159_s18  }
 0x2d1 PF: > { %s1187_s27 = sand.u32 1, %s1542_s15   ;;  %p2288_p7 = scmp.ne.s32.totalorder %s2281_s30, 0 }
 0x2d2   : > { %p2289_p10 = scmp.ge.s32.totalorder %s1562_s20, 2  ;;  %s1188_s12 = scalar_lea.sflag [#allocation4], %s1187_s27 }
 0x2d4   : > { %p1344_p12 = pnand %p2289_p10, %p2288_p7 }
 0x2d6   : > { %1537 = dma.done.wait (!%p1344_p12), %s1188_s12, 512  }
 0x2d7   : > { %1539 = vsyncadd (!%p1344_p12), %s1188_s12, 4294966784  ;;  %s23_s20 = sadd.s32 1, %s1562_s20   ;;  %s2290_s15 = smov %s1546_s16 }
 0x2d8   : > { %p20_p9 = scmp.ge.s32.totalorder %s23_s20, 4   ;;  %s2291_s16 = smov %s1550_s17 }
 0x2d9   : > { %s2292_s17 = smov %s1662_s29  ;;  %s2293_s18 = smov %s1558_s19 }
 0x2da   : > { %s2294_s19 = smov %s2296_s23  ;;  %22 = sbr.rel (!%p20_p9) target bundleno = 8 (0x8), region = 94 }
 0x2e1   :  { %1193 = vsyncpa [#allocation3], 1 }
 0x2e2   :  { %1195 = vsyncpa [#allocation3 + $0x1], 1 }
 0x2e3   :  { %1196 = vsyncpa [#allocation6], 1 }
 0x2e4   :  { %1198 = vsyncpa [#allocation6 + $0x1], 1 }
 0x2e5   :  { %1199 = vsyncpa [#allocation4], 1 }
 0x2e6   :  { %1201 = vsyncpa [#allocation4 + $0x1], 1 }

</bundles_post_ra>
